<compile_context>
chip_gen: v5e
topology: v5e:2x2
jax: 0.10.0
libtpu: 0.0.40
codegen_flags: <defaults>
</compile_context>

<pallas_src>
import jax
import jax.numpy as jnp
from jax.experimental import pallas as pl
from jax.experimental.pallas import tpu as pltpu

EPS = 1e-5


# ----------------------------------------------------------------------------- kernel
def residual_block_kernel(x_ref, w1_ref, p1_ref, w2_ref, p2_ref, o_ref):
    x = x_ref[...]                                            # (B, Dp) f32

    # ---- fc1 on the MXU: bf16 weights (pre-cast), f32 accumulation.
    # Linear bias is dropped: training-mode BN's mean subtraction cancels it exactly.
    h = jnp.dot(x.astype(jnp.bfloat16), w1_ref[...],
                preferred_element_type=jnp.float32)           # (B, Hp)

    # ---- bn1 (training mode), two-pass stats, affine applied on centered values ----
    p1 = p1_ref[...]                                          # (2, Hp): [gamma; beta]
    mean1 = jnp.mean(h, axis=0, keepdims=True)                # XLU reduce (free slot)
    c1 = h - mean1
    var1 = jnp.mean(c1 * c1, axis=0, keepdims=True)           # two-pass (robust)
    scale1 = p1[0:1, :] * jax.lax.rsqrt(var1 + EPS)           # rsqrt -> EUP slot
    h = jnp.maximum(c1 * scale1 + p1[1:2, :], 0.0)            # bn1 + ReLU

    # ---- fc2 on the MXU ----
    o = jnp.dot(h.astype(jnp.bfloat16), w2_ref[...],
                preferred_element_type=jnp.float32)           # (B, Dp)

    # ---- bn2 + residual + ReLU ----
    p2 = p2_ref[...]                                          # (2, Dp): [gamma; beta]
    mean2 = jnp.mean(o, axis=0, keepdims=True)
    c2 = o - mean2
    var2 = jnp.mean(c2 * c2, axis=0, keepdims=True)
    scale2 = p2[0:1, :] * jax.lax.rsqrt(var2 + EPS)
    o_ref[...] = jnp.maximum(c2 * scale2 + p2[1:2, :] + x, 0.0)


# ----------------------------------------------------------------------------- helpers
def _round_up(n, m):
    return ((n + m - 1) // m) * m


def _feature_granule():
    """256-wide MXU generations (v6e / v7x) prefer 256-granule padding for dims
    above 128; v5e (4x128x128) keeps 128.  Defaults to 128 if unknown."""
    try:
        kind = jax.devices()[0].device_kind.lower()
    except Exception:
        return 128
    if ("v6" in kind) or ("v7" in kind) or ("trillium" in kind):
        return 256
    return 128


def prepare_residual_block_params(w1, b1, g1, be1, w2, b2, g2, be2):
    """One-time (init-time) parameter packing — keep this OUT of the hot path.

    * Pads feature dims to lane-dense multiples (128, or 256 on v6e/v7x when
      the dim exceeds 128).  Padded columns of w/gamma/beta are zero, so they
      stay exactly zero through fc/bn/relu and never touch real columns.
    * Casts the padded weights to bf16 (MXU operand dtype; f32 accumulate).
    * Stacks gamma/beta into (2, F) arrays -> 2 param DMAs instead of 6.
    * b1/b2 are accepted for nn.Linear API parity but dropped: a Linear bias
      immediately followed by training-mode BatchNorm is cancelled exactly by
      the mean subtraction.
    """
    del b1, b2
    D_in, H = w1.shape
    gran = _feature_granule()
    Dp = _round_up(D_in, 128 if D_in <= 128 else gran)
    Hp = _round_up(H, 128 if H <= 128 else gran)

    w1_p = jnp.pad(w1, ((0, Dp - D_in), (0, Hp - H))).astype(jnp.bfloat16)
    w2_p = jnp.pad(w2, ((0, Hp - H), (0, Dp - D_in))).astype(jnp.bfloat16)
    p1 = jnp.stack([jnp.pad(g1, (0, Hp - H)),
                    jnp.pad(be1, (0, Hp - H))]).astype(jnp.float32)        # (2, Hp)
    p2 = jnp.stack([jnp.pad(g2, (0, Dp - D_in)),
                    jnp.pad(be2, (0, Dp - D_in))]).astype(jnp.float32)     # (2, Dp)
    return {"D_in": D_in, "H": H, "Dp": Dp, "Hp": Hp,
            "w1": w1_p, "p1": p1, "w2": w2_p, "p2": p2}


# ----------------------------------------------------------------------------- wrapper
def residual_block(x, params):
    """x: (B, D_in) f32.  params: output of prepare_residual_block_params."""
    B, D_in = x.shape
    assert D_in == params["D_in"]
    Dp, Hp = params["Dp"], params["Hp"]

    x_p = jnp.pad(x, ((0, 0), (0, Dp - D_in)))   # lane-dense activation (per-call, cheap)

    full = lambda shape: pl.BlockSpec(shape, lambda: (0,) * len(shape))

    cost = pl.CostEstimate(
        flops=4 * B * Dp * Hp,                                    # two matmuls
        transcendentals=Hp + Dp,                                  # rsqrt per feature
        bytes_accessed=(2 * B * Dp * 4                            # x in + out
                        + Dp * Hp * 2 + Hp * Dp * 2               # bf16 weights
                        + 2 * Hp * 4 + 2 * Dp * 4),               # gamma/beta packs
    )

    out_p = pl.pallas_call(
        residual_block_kernel,
        out_shape=jax.ShapeDtypeStruct((B, Dp), jnp.float32),
        grid_spec=pltpu.PrefetchScalarGridSpec(
            num_scalar_prefetch=0,
            grid=(),
            in_specs=[
                full((B, Dp)),    # x (padded, f32)
                full((Dp, Hp)),   # w1 (padded, bf16)
                full((2, Hp)),    # [gamma1; beta1]
                full((Hp, Dp)),   # w2 (padded, bf16)
                full((2, Dp)),    # [gamma2; beta2]
            ],
            out_specs=full((B, Dp)),
        ),
        compiler_params=pltpu.CompilerParams(),
        cost_estimate=cost,
    )(x_p, params["w1"], params["p1"], params["w2"], params["p2"])
    return out_p[:, :D_in]


# ----------------------------------------------------------------------------- reference
def _ref_forward(x, w1, b1, g1, be1, w2, b2, g2, be2):
    """Pure-JAX f32 reference with exact PyTorch semantics (biases included)."""
    def bn(h, g, b):
        m = jnp.mean(h, axis=0, keepdims=True)
        v = jnp.mean((h - m) ** 2, axis=0, keepdims=True)
        return (h - m) / jnp.sqrt(v + EPS) * g + b
    h = jnp.maximum(bn(x @ w1 + b1, g1, be1), 0.0)
    o = bn(h @ w2 + b2, g2, be2) + x
    return jnp.maximum(o, 0.0)


# ----------------------------------------------------------------------------- main
if __name__ == "__main__":
    # Small, module-consistent shapes: batch=8, input_dim=32, hidden_dim=64.
    B, D_IN, HID = 8, 32, 64

    key = jax.random.PRNGKey(0)
    kx, k1, k2, k3, k4 = jax.random.split(key, 5)

    x = jax.random.normal(kx, (B, D_IN), dtype=jnp.float32)

    # PyTorch-like uniform fan-in init (weights already transposed vs torch).
    bound1 = 1.0 / jnp.sqrt(D_IN)
    w1 = jax.random.uniform(k1, (D_IN, HID), jnp.float32, -bound1, bound1)
    b1 = jax.random.uniform(k2, (HID,), jnp.float32, -bound1, bound1)
    bound2 = 1.0 / jnp.sqrt(HID)
    w2 = jax.random.uniform(k3, (HID, D_IN), jnp.float32, -bound2, bound2)
    b2 = jax.random.uniform(k4, (D_IN,), jnp.float32, -bound2, bound2)

    # BatchNorm affine params: PyTorch default init (gamma=1, beta=0).
    g1, be1 = jnp.ones((HID,), jnp.float32), jnp.zeros((HID,), jnp.float32)
    g2, be2 = jnp.ones((D_IN,), jnp.float32), jnp.zeros((D_IN,), jnp.float32)

    # One-time parameter packing (pad + stack + bf16 cast) -- outside hot path.
    params = prepare_residual_block_params(w1, b1, g1, be1, w2, b2, g2, be2)

    # Params are closed over as jit constants, so the pad/stack/cast never
    # re-executes per forward call.
    fwd = jax.jit(lambda xx: residual_block(xx, params))

    out = jax.block_until_ready(fwd(x))

    ref = _ref_forward(x, w1, b1, g1, be1, w2, b2, g2, be2)
    assert out.shape == (B, D_IN)
    # Tolerance covers bf16 MXU operands (f32 accumulate); BN math itself is
    # f32 two-pass and the bias-drop is exact.
    assert jnp.allclose(out, ref, atol=3e-2, rtol=3e-2), "mismatch vs reference"

    print("KERNEL_OK")
</pallas_src>

<mosaic_0001>
module attributes {stable_mosaic.version = 11 : i64} {
  func.func @residual_block_kernel(%arg0: memref<8x128xf32, #tpu.memory_space<vmem>>, %arg1: memref<128x128xbf16, #tpu.memory_space<vmem>>, %arg2: memref<2x128xf32, #tpu.memory_space<vmem>>, %arg3: memref<128x128xbf16, #tpu.memory_space<vmem>>, %arg4: memref<2x128xf32, #tpu.memory_space<vmem>>, %arg5: memref<8x128xf32, #tpu.memory_space<vmem>>) attributes {dimension_semantics = [], scalar_prefetch = 0 : i64, scratch_operands = 0 : i64, tpu.core_type = #tpu.core_type<tc>} {
    %c0 = arith.constant 0 : index
    %c0_0 = arith.constant 0 : index
    %0 = vector.load %arg0[%c0, %c0_0] : memref<8x128xf32, #tpu.memory_space<vmem>>, vector<8x128xf32>
    %1 = arith.truncf %0 : vector<8x128xf32> to vector<8x128xbf16>
    %c0_1 = arith.constant 0 : index
    %c0_2 = arith.constant 0 : index
    %2 = vector.load %arg1[%c0_1, %c0_2] : memref<128x128xbf16, #tpu.memory_space<vmem>>, vector<128x128xbf16>
    %cst = arith.constant dense<0.000000e+00> : vector<8x128xf32>
    %3 = tpu.matmul %1, %2, %cst {dimension_numbers = #tpu.dot_dimension_numbers<[1], [0], [0], [1], [0, 0, 1, 1], [], []>} : vector<8x128xbf16>, vector<128x128xbf16>, vector<8x128xf32> -> vector<8x128xf32>
    %c0_3 = arith.constant 0 : index
    %c0_4 = arith.constant 0 : index
    %4 = vector.load %arg2[%c0_3, %c0_4] : memref<2x128xf32, #tpu.memory_space<vmem>>, vector<2x128xf32>
    %cst_5 = arith.constant dense<0.000000e+00> : vector<128xf32>
    %5 = vector.multi_reduction <add>, %3, %cst_5 [0] : vector<8x128xf32> to vector<128xf32>
    %6 = vector.shape_cast %5 : vector<128xf32> to vector<1x128xf32>
    %cst_6 = arith.constant 8.000000e+00 : f32
    %7 = vector.broadcast %cst_6 : f32 to vector<1x128xf32>
    %8 = arith.divf %6, %7 : vector<1x128xf32>
    %9 = vector.broadcast %8 : vector<1x128xf32> to vector<8x128xf32>
    %10 = arith.subf %3, %9 : vector<8x128xf32>
    %11 = arith.mulf %10, %10 : vector<8x128xf32>
    %cst_7 = arith.constant dense<0.000000e+00> : vector<128xf32>
    %12 = vector.multi_reduction <add>, %11, %cst_7 [0] : vector<8x128xf32> to vector<128xf32>
    %13 = vector.shape_cast %12 : vector<128xf32> to vector<1x128xf32>
    %cst_8 = arith.constant 8.000000e+00 : f32
    %14 = vector.broadcast %cst_8 : f32 to vector<1x128xf32>
    %15 = arith.divf %13, %14 : vector<1x128xf32>
    %16 = vector.extract_strided_slice %4 {offsets = [0, 0], sizes = [1, 128], strides = [1, 1]} : vector<2x128xf32> to vector<1x128xf32>
    %cst_9 = arith.constant 9.99999974E-6 : f32
    %17 = vector.broadcast %cst_9 : f32 to vector<1x128xf32>
    %18 = arith.addf %15, %17 : vector<1x128xf32>
    %19 = math.rsqrt %18 : vector<1x128xf32>
    %20 = arith.mulf %16, %19 : vector<1x128xf32>
    %21 = vector.broadcast %20 : vector<1x128xf32> to vector<8x128xf32>
    %22 = arith.mulf %10, %21 : vector<8x128xf32>
    %23 = vector.extract_strided_slice %4 {offsets = [1, 0], sizes = [1, 128], strides = [1, 1]} : vector<2x128xf32> to vector<1x128xf32>
    %24 = vector.broadcast %23 : vector<1x128xf32> to vector<8x128xf32>
    %25 = arith.addf %22, %24 : vector<8x128xf32>
    %cst_10 = arith.constant 0.000000e+00 : f32
    %26 = vector.broadcast %cst_10 : f32 to vector<8x128xf32>
    %27 = arith.maximumf %25, %26 : vector<8x128xf32>
    %28 = arith.truncf %27 : vector<8x128xf32> to vector<8x128xbf16>
    %c0_11 = arith.constant 0 : index
    %c0_12 = arith.constant 0 : index
    %29 = vector.load %arg3[%c0_11, %c0_12] : memref<128x128xbf16, #tpu.memory_space<vmem>>, vector<128x128xbf16>
    %cst_13 = arith.constant dense<0.000000e+00> : vector<8x128xf32>
    %30 = tpu.matmul %28, %29, %cst_13 {dimension_numbers = #tpu.dot_dimension_numbers<[1], [0], [0], [1], [0, 0, 1, 1], [], []>} : vector<8x128xbf16>, vector<128x128xbf16>, vector<8x128xf32> -> vector<8x128xf32>
    %c0_14 = arith.constant 0 : index
    %c0_15 = arith.constant 0 : index
    %31 = vector.load %arg4[%c0_14, %c0_15] : memref<2x128xf32, #tpu.memory_space<vmem>>, vector<2x128xf32>
    %cst_16 = arith.constant dense<0.000000e+00> : vector<128xf32>
    %32 = vector.multi_reduction <add>, %30, %cst_16 [0] : vector<8x128xf32> to vector<128xf32>
    %33 = vector.shape_cast %32 : vector<128xf32> to vector<1x128xf32>
    %cst_17 = arith.constant 8.000000e+00 : f32
    %34 = vector.broadcast %cst_17 : f32 to vector<1x128xf32>
    %35 = arith.divf %33, %34 : vector<1x128xf32>
    %36 = vector.broadcast %35 : vector<1x128xf32> to vector<8x128xf32>
    %37 = arith.subf %30, %36 : vector<8x128xf32>
    %38 = arith.mulf %37, %37 : vector<8x128xf32>
    %cst_18 = arith.constant dense<0.000000e+00> : vector<128xf32>
    %39 = vector.multi_reduction <add>, %38, %cst_18 [0] : vector<8x128xf32> to vector<128xf32>
    %40 = vector.shape_cast %39 : vector<128xf32> to vector<1x128xf32>
    %cst_19 = arith.constant 8.000000e+00 : f32
    %41 = vector.broadcast %cst_19 : f32 to vector<1x128xf32>
    %42 = arith.divf %40, %41 : vector<1x128xf32>
    %43 = vector.extract_strided_slice %31 {offsets = [0, 0], sizes = [1, 128], strides = [1, 1]} : vector<2x128xf32> to vector<1x128xf32>
    %cst_20 = arith.constant 9.99999974E-6 : f32
    %44 = vector.broadcast %cst_20 : f32 to vector<1x128xf32>
    %45 = arith.addf %42, %44 : vector<1x128xf32>
    %46 = math.rsqrt %45 : vector<1x128xf32>
    %47 = arith.mulf %43, %46 : vector<1x128xf32>
    %48 = vector.broadcast %47 : vector<1x128xf32> to vector<8x128xf32>
    %49 = arith.mulf %37, %48 : vector<8x128xf32>
    %50 = vector.extract_strided_slice %31 {offsets = [1, 0], sizes = [1, 128], strides = [1, 1]} : vector<2x128xf32> to vector<1x128xf32>
    %51 = vector.broadcast %50 : vector<1x128xf32> to vector<8x128xf32>
    %52 = arith.addf %49, %51 : vector<8x128xf32>
    %53 = arith.addf %52, %0 : vector<8x128xf32>
    %cst_21 = arith.constant 0.000000e+00 : f32
    %54 = vector.broadcast %cst_21 : f32 to vector<8x128xf32>
    %55 = arith.maximumf %53, %54 : vector<8x128xf32>
    %c0_22 = arith.constant 0 : index
    %c0_23 = arith.constant 0 : index
    %56 = vector.load %arg5[%c0_22, %c0_23] : memref<8x128xf32, #tpu.memory_space<vmem>>, vector<8x128xf32>
    tpu.vector_store %arg5[%c0_22, %c0_23], %55 {strides = array<i32>} : memref<8x128xf32, #tpu.memory_space<vmem>>, vector<8x128xf32>,
    return
  }
}

</mosaic_0001>

<bundles_post_ra>
// kernel: _lambda_.1
= control target key start
LH: loop header
LB: loop body
LE: loop exit
PB: predicated region body
PF: predicated region fallthrough
CT: control target
= control target key end

     0   :  { %10 = vsyncpa [#allocation3], 0  ;;  %s534_s0 = inlined_call_operand.vmem [shape: f32[8,128], index: 0, kind: input, shape index: {}]   ;;  %s535_s1 = inlined_call_operand.hbm [shape: bf16[128,128], index: 1, kind: input, shape index: {}]   ;;  %s536_s2 = inlined_call_operand.vmem [shape: f32[2,128], index: 2, kind: input, shape index: {}]   ;;  %s537_s3 = inlined_call_operand.hbm [shape: bf16[128,128], index: 3, kind: input, shape index: {}]   ;;  %s538_s4 = inlined_call_operand.vmem [shape: f32[2,128], index: 4, kind: input, shape index: {}]   ;;  %s539_s5 = inlined_call_operand.hbm [shape: f32[8,128], index: 5, kind: output, shape index: {}]  }
   0x1   :  { %11 = vsyncpa [#allocation6], 0 }
   0x2   :  { %12 = vsyncpa [#allocation4], 0  ;;  %s19_s20 = sshll.u32 %s535_s1, 4  ;;  %s475_s21 = smov [#allocation2]   ;;  %s20_s20 = int_to_ptr.hbm [resolvable:$true] %s19_s20 }
   0x3   :  { %s21_s22 = sshll.u32 %s475_s21, 4  ;;  %s34_s25 = sshll.u32 %s537_s3, 4  ;;  %s22_s22 = int_to_ptr.vmem [resolvable:$true] %s21_s22  ;;  %s35_s25 = int_to_ptr.hbm [resolvable:$true] %s34_s25 }
   0x4   :  { %s476_s26 = smov 64   ;;  %s477_s27 = smov 4  }
   0x5   :  { %27 = dma.hbm_to_vmem [thread:$0]  %s20_s20, 1024, %s22_s22, [#allocation3], %s476_s26, %s476_s26, %s477_s27  }
   0x6   :  { %s478_s28 = smov [#allocation5]  }
   0x7   :  { %s36_s29 = sshll.u32 %s478_s28, 4  ;;  %s37_s29 = int_to_ptr.vmem [resolvable:$true] %s36_s29 }
   0x8   :  { %42 = dma.hbm_to_vmem [thread:$0]  %s35_s25, 1024, %s37_s29, [#allocation6], %s476_s26, %s476_s26, %s477_s27  }
   0x9   :  { %469 = dma.done.wait [#allocation3], 1024  }
   0xa   :  { %470 = vsyncadd [#allocation3], 4294966272 }
   0xb   :  { %471 = dma.done.wait [#allocation6], 1024  }
   0xc   :  { %472 = vsyncadd [#allocation6], 4294966272  ;;  %v376_v0 = vld [vmem:[#allocation2 + $0x38] sm:$0xff]  ;;  %v375_v1 = vld [vmem:[#allocation2 + $0x30] sm:$0xff]  ;;  %v479_v10 = vmov 8.0   ;;  %s480_s7 = smov [#allocation7]  }
   0xd   :  { %119 = vmatpush.bf16.msra.mxu0 %v376_v0  ;;  %v374_v2 = vld [vmem:[#allocation2 + $0x28] sm:$0xff]  ;;  %v373_v3 = vld [vmem:[#allocation2 + $0x20] sm:$0xff]  ;;  %v372_v4 = vld [vmem:[#allocation2 + $0x18] sm:$0xff]  ;;  %391 = vrcp.f32 %v479_v10  ;;  %s292_s8 = sshll.u32 %s480_s7, 4  ;;  %s294_s11 = sshll.u32 %s539_s5, 4  ;;  %s293_s8 = int_to_ptr.vmem [resolvable:$true] %s292_s8  ;;  %s295_s11 = int_to_ptr.hbm [resolvable:$true] %s294_s11 }
   0xe   :  { %v371_v5 = vld [vmem:[#allocation2 + $0x10] sm:$0xff]  ;;  %v370_v6 = vld [vmem:[#allocation2 + $0x8] sm:$0xff]  ;;  %v369_v7 = vld [vmem:[#allocation2] sm:$0xff] }
   0xf   :  { %v520_v8 = vld [vmem:[%s534_s0] sm:$0xff]  ;;  %v384_v15 = vld [vmem:[#allocation5 + $0x38] sm:$0xff]  ;;  %v383_v19 = vld [vmem:[#allocation5 + $0x30] sm:$0xff] }
  0x10   :  { %v54_v9 = vpack.c.bf16 %v520_v8, %v520_v8  ;;  %238 = vmatpush.bf16.msra.mxu1 %v384_v15  ;;  %v382_v22 = vld [vmem:[#allocation5 + $0x28] sm:$0xff]  ;;  %v381_v27 = vld [vmem:[#allocation5 + $0x20] sm:$0xff]  ;;  %v380_v30 = vld [vmem:[#allocation5 + $0x18] sm:$0xff] }
  0x11   :  { %120 = vmatpush.bf16.msra.mxu0 %v375_v1  ;;  %v379_v33 = vld [vmem:[#allocation5 + $0x10] sm:$0xff]  ;;  %v378_v36 = vld [vmem:[#allocation5 + $0x8] sm:$0xff]  ;;  %v377_v39 = vld [vmem:[#allocation5] sm:$0xff] }
  0x12   :  { %v132_v49 = vld [vmem:[%s536_s2] sm:$0x3] }
  0x13   :  { %v392_v11 = vpop.eup %391  ;;  %v170_v54 = vperm.slane %v132_v49, 1 }
  0x14   :  { %v140_v12 = vmul.f32 8.0, %v392_v11  ;;  %239 = vmatpush.bf16.msra.mxu1 %v383_v19  ;;  %vm144_vm0 = vweird.f32 %v392_v11 }
  0x15   :  { %121 = vmatpush.bf16.msra.mxu0 %v374_v2 }
  0x16   :  { %v141_v13 = vsub.f32 1.0, %v140_v12 }
  0x18   :  { %v142_v17 = vmul.f32 %v392_v11, %v141_v13  ;;  %240 = vmatpush.bf16.msra.mxu1 %v382_v22 }
  0x19   :  { %122 = vmatpush.bf16.msra.mxu0 %v373_v3 }
  0x1a   :  { %v143_v21 = vadd.f32 %v392_v11, %v142_v17 }
  0x1c   :  { %v145_v26 = vsel %vm144_vm0, %v392_v11, %v143_v21  ;;  %241 = vmatpush.bf16.msra.mxu1 %v381_v27 }
  0x1d   :  { %123 = vmatpush.bf16.msra.mxu0 %v372_v4 }
  0x20   :  { %242 = vmatpush.bf16.msra.mxu1 %v380_v30 }
  0x21   :  { %124 = vmatpush.bf16.msra.mxu0 %v371_v5 }
  0x24   :  { %243 = vmatpush.bf16.msra.mxu1 %v379_v33 }
  0x25   :  { %125 = vmatpush.bf16.msra.mxu0 %v370_v6 }
  0x28   :  { %244 = vmatpush.bf16.msra.mxu1 %v378_v36 }
  0x29   :  { %126 = vmatpush.bf16.msra.mxu0 %v369_v7 }
  0x2c   :  { %127 = vmatmul.bf16.vlgmr.msra.gmra.mxu0 %v54_v9  ;;  %245 = vmatpush.bf16.msra.mxu1 %v377_v39 }
  0xa9   :  { %v128_v14 = vpop.f32.mrf.mxu0 }
  0xaa   :  { %v133_v16 = vrot.slane %v128_v14, 4 }
  0xac   :  { %v134_v18 = vadd.f32 %v133_v16, %v128_v14 }
  0xae   :  { %v135_v20 = vrot.slane %v134_v18, 2 }
  0xb0   :  { %v136_v23 = vadd.f32 %v135_v20, %v134_v18  ;;  %v251_v20 = vld [vmem:[%s538_s4] sm:$0x3] }
  0xb1   :  { %v130_v24 = vpop.f32.mrf.mxu0 }
  0xb2   :  { %v137_v25 = vrot.slane %v136_v23, 1 }
  0xb4   :  { %v138_v28 = vadd.f32 %v137_v25, %v136_v23  ;;  %v282_v25 = vperm.slane %v251_v20, 1 }
  0xb6   :  { %v146_v29 = vmul.f32 %v145_v26, %v138_v28 }
  0xb8   :  { %v147_v31 = vsub.f32 %v128_v14, %v146_v29 }
  0xba   :  { %v148_v32 = vmul.f32 %v147_v31, %v147_v31 }
  0xbc   :  { %v149_v34 = vrot.slane %v148_v32, 4 }
  0xbe   :  { %v150_v35 = vadd.f32 %v149_v34, %v148_v32 }
  0xc0   :  { %v151_v37 = vrot.slane %v150_v35, 2 }
  0xc2   :  { %v152_v38 = vadd.f32 %v151_v37, %v150_v35 }
  0xc4   :  { %v153_v40 = vrot.slane %v152_v38, 1 }
  0xc6   :  { %v154_v41 = vadd.f32 %v153_v40, %v152_v38 }
  0xc8   :  { %v155_v42 = vmul.f32 %v154_v41, %v145_v26 }
  0xca   :  { %v156_v43 = vadd.f32 1e-05, %v155_v42 }
  0xcc   :  { %393 = vrsqrt.f32 %v156_v43  ;;  %vm163_vm2 = vweird.f32 %v156_v43 }
  0xd2   :  { %v394_v44 = vpop.eup %393 }
  0xd3   :  { %v158_v45 = vmul.f32 %v394_v44, %v156_v43  ;;  %vm164_vm1 = vweird.f32 %v394_v44 }
  0xd4   :  { %vm165_vm3 = vmor %vm163_vm2, %vm164_vm1 }
  0xd5   :  { %v159_v46 = vmul.f32 %v394_v44, %v158_v45 }
  0xd7   :  { %v160_v47 = vmul.f32 0.5, %v159_v46 }
  0xd9   :  { %v161_v48 = vsub.f32 1.5, %v160_v47 }
  0xdb   :  { %v162_v50 = vmul.f32 %v394_v44, %v161_v48 }
  0xdd   :  { %v166_v51 = vsel %vm165_vm3, %v394_v44, %v162_v50 }
  0xde   :  { %v167_v52 = vmul.f32 %v166_v51, %v132_v49 }
  0xe0   :  { %v168_v53 = vperm.slane %v167_v52, 0 }
  0xe2   :  { %v169_v55 = vmul.f32 %v168_v53, %v147_v31 }
  0xe4   :  { %v171_v56 = vadd.f32 %v170_v54, %v169_v55 }
  0xe6   :  { %v172_v57 = vmax.f32 %v171_v56, 0.0 }
  0xe8   :  { %v173_v58 = vpack.c.bf16 %v172_v57, %v172_v57 }
  0xea   :  { %246 = vmatmul.bf16.vlgmr.msra.gmra.mxu1 %v173_v58 }
 0x167   :  { %v247_v59 = vpop.f32.mrf.mxu1 }
 0x168   :  { %v252_v60 = vrot.slane %v247_v59, 4 }
 0x16a   :  { %v253_v61 = vadd.f32 %v252_v60, %v247_v59 }
 0x16c   :  { %v254_v62 = vrot.slane %v253_v61, 2 }
 0x16e   :  { %v255_v63 = vadd.f32 %v254_v62, %v253_v61 }
 0x16f   :  { %v249_v0 = vpop.f32.mrf.mxu1 }
 0x170   :  { %v256_v1 = vrot.slane %v255_v63, 1 }
 0x172   :  { %v257_v2 = vadd.f32 %v256_v1, %v255_v63 }
 0x174   :  { %v258_v3 = vmul.f32 %v257_v2, %v145_v26 }
 0x176   :  { %v259_v4 = vsub.f32 %v247_v59, %v258_v3 }
 0x178   :  { %v260_v5 = vmul.f32 %v259_v4, %v259_v4 }
 0x17a   :  { %v261_v6 = vrot.slane %v260_v5, 4 }
 0x17c   :  { %v262_v7 = vadd.f32 %v261_v6, %v260_v5 }
 0x17e   :  { %v263_v9 = vrot.slane %v262_v7, 2 }
 0x180   :  { %v264_v10 = vadd.f32 %v263_v9, %v262_v7 }
 0x182   :  { %v265_v11 = vrot.slane %v264_v10, 1 }
 0x184   :  { %v266_v12 = vadd.f32 %v265_v11, %v264_v10 }
 0x186   :  { %v267_v13 = vmul.f32 %v266_v12, %v145_v26 }
 0x188   :  { %v268_v14 = vadd.f32 1e-05, %v267_v13 }
 0x18a   :  { %395 = vrsqrt.f32 %v268_v14  ;;  %vm275_vm5 = vweird.f32 %v268_v14 }
 0x190   :  { %v396_v15 = vpop.eup %395 }
 0x191   :  { %v270_v16 = vmul.f32 %v396_v15, %v268_v14  ;;  %vm276_vm4 = vweird.f32 %v396_v15 }
 0x192   :  { %vm277_vm6 = vmor %vm275_vm5, %vm276_vm4 }
 0x193   :  { %v271_v17 = vmul.f32 %v396_v15, %v270_v16 }
 0x195   :  { %v272_v18 = vmul.f32 0.5, %v271_v17 }
 0x197   :  { %v273_v19 = vsub.f32 1.5, %v272_v18 }
 0x199   :  { %v274_v21 = vmul.f32 %v396_v15, %v273_v19 }
 0x19b   :  { %v278_v22 = vsel %vm277_vm6, %v396_v15, %v274_v21 }
 0x19c   :  { %v279_v23 = vmul.f32 %v278_v22, %v251_v20 }
 0x19e   :  { %v280_v24 = vperm.slane %v279_v23, 0 }
 0x1a0   :  { %v281_v26 = vmul.f32 %v280_v24, %v259_v4 }
 0x1a2   :  { %v283_v27 = vadd.f32 %v282_v25, %v281_v26 }
 0x1a4   :  { %v284_v28 = vadd.f32 %v283_v27, %v520_v8 }
 0x1a6   :  { %v285_v29 = vmax.f32 %v284_v28, 0.0 }
 0x1a8   :  { %286 = vst [vmem:[#allocation7] sm:$0xff] %v285_v29 }
 0x1a9   :  { %297 = dma.vmem_to_hbm [thread:$0]  %s293_s8, 128, %s295_s11, [#allocation4]  }
 0x1aa   :  { %473 = dma.done.wait [#allocation4], 128  }
 0x1ab   :  { %474 = vsyncadd [#allocation4], 4294967168 }
 0x1ac   :  { %302 = vsyncpa [#allocation3], 1 }
 0x1ad   :  { %303 = vsyncpa [#allocation6], 1 }
 0x1ae   :  { %304 = vsyncpa [#allocation4], 1 }

</bundles_post_ra>
